<compile_context>
chip_gen: v5e
topology: v5e:2x2
jax: 0.10.0
libtpu: 0.0.40
codegen_flags: <defaults>
</compile_context>

<pallas_src>
import functools

import jax
import jax.numpy as jnp
import numpy as np
from jax.experimental import pallas as pl
from jax.experimental.pallas import tpu as pltpu


def _rup(a, b):
    return (a + b - 1) // b * b


def _mtm_head_kernel(x_ref, w_ref, b_ref, t_ref, loss_ref,
                     m_ref, l_ref, p_ref, *, total_n, tile_n, tile_v):
    """Grid = (row_tiles, vocab_tiles); online logsumexp over vocab tiles.

    x_ref:    (tile_n, E)  bf16/f32   row tile (resident across vocab axis)
    w_ref:    (E, tile_v)  bf16/f32   weight^T vocab slice
    b_ref:    (1, V_pad)   f32        resident bias (padded cols hold -1e30)
    t_ref:    (tile_n, 1)  int32      target class per row
    loss_ref: (8, 128)     f32        per-row-tile partial loss sum (lane-dense)
    m/l/p:    (tile_n, 1)  f32        running max / running sum-exp / picked
    """
    i = pl.program_id(0)                 # row-tile index   ("parallel")
    j = pl.program_id(1)                 # vocab-tile index ("arbitrary", innermost)
    nj = pl.num_programs(1)

    @pl.when(j == 0)
    def _init():
        m_ref[...] = jnp.full_like(m_ref, -jnp.inf)
        l_ref[...] = jnp.zeros_like(l_ref)
        p_ref[...] = jnp.zeros_like(p_ref)

    # Logits for this vocab slice: native-dtype operands straight into the MXU,
    # f32 accumulation; bias sliced from the resident f32 copy.
    v_start = pl.multiple_of(j * tile_v, 128)
    logits = jnp.dot(x_ref[...], w_ref[...], preferred_element_type=jnp.float32)
    logits = logits + b_ref[:, pl.ds(v_start, tile_v)]          # (tile_n, tile_v)

    # Online (streaming) logsumexp across vocab tiles.
    m_old = m_ref[...]
    m_new = jnp.maximum(m_old, jnp.max(logits, axis=-1, keepdims=True))
    l_ref[...] = (l_ref[...] * jnp.exp(m_old - m_new)
                  + jnp.sum(jnp.exp(logits - m_new), axis=-1, keepdims=True))
    m_ref[...] = m_new

    # Accumulate logits[r, target_r]: compare the *local* lane iota against the
    # target shifted into this tile's coordinates ((tile_n,1) subtract only; no
    # full-tile integer add per step).
    col_local = jax.lax.broadcasted_iota(jnp.int32, logits.shape, 1)
    t_local = t_ref[...] - j * tile_v                            # (tile_n, 1)
    p_ref[...] += jnp.sum(jnp.where(col_local == t_local, logits, 0.0),
                          axis=-1, keepdims=True)

    @pl.when(j == nj - 1)
    def _finalize():
        lse = m_ref[...] + jnp.log(l_ref[...])                   # (tile_n, 1)
        row = i * tile_n + jax.lax.broadcasted_iota(jnp.int32, (tile_n, 1), 0)
        per_row = jnp.where(row < total_n, lse - p_ref[...], 0.0)
        # One f32 partial per row tile, broadcast into a lane-dense (8,128) slab.
        part = jnp.sum(per_row, keepdims=True)                   # (1, 1)
        loss_ref[...] = jnp.broadcast_to(part, loss_ref.shape)


def mtm_head_loss(x, origin_nodes, weight_t, bias, *,
                  tile_n=1024, tile_v=2048, compute_dtype=jnp.bfloat16):
    """
    x:            (batch, seq, embed)   float
    origin_nodes: (batch, seq)          int   (class ids in [0, num_nodes))
    weight_t:     (embed, num_nodes)    nn.Linear weight, transposed
    bias:         (num_nodes,)
    Returns scalar mean cross-entropy loss (float32).
    """
    B, S, E = x.shape
    V = weight_t.shape[1]
    N = B * S
    in_itemsize = jnp.dtype(compute_dtype).itemsize

    # Row tiling: big default (the weight is re-streamed once per row tile);
    # shrink for tiny inputs, keep a multiple of 16 (bf16 sublane packing).
    tile_n = _rup(min(tile_n, _rup(N, 16)), 16)
    # Vocab tiling: lane-aligned (multiple of 128), capped by the padded vocab.
    tile_v = _rup(min(tile_v, _rup(V, 128)), 128)

    # Per-generation VMEM budget (v5e/v6e 128 MiB -> ~96 MiB, v7x 64 MiB -> ~48
    # MiB); fall back to the v7x-safe budget if the query is unavailable.
    try:
        vmem_cap = int(pltpu.get_tpu_info().vmem_capacity_bytes)
    except Exception:  # pragma: no cover - conservative fallback
        vmem_cap = 64 * 1024 * 1024
    budget = int(0.75 * vmem_cap)

    def est_bytes(tn, tv):
        return int(
            2 * tn * E * in_itemsize      # x row tile (double-buffered)
            + 2 * E * tv * in_itemsize    # weight^T vocab slice (double-buffered)
            + 2 * _rup(V, tv) * 4         # resident bias (f32)
            + 2 * tn * 4                  # targets
            + 2 * 8 * 128 * 4             # per-tile output slab
            + 3 * tn * 128 * 4            # m/l/p scratch (lane-padded f32)
            + 4 * tn * tv * 4             # logits/exp/select f32 temporaries
        )

    # Let the VMEM estimate drive the tile choice: shrink tile_v (never tile_n).
    while tile_v > 128 and est_bytes(tile_n, tile_v) > budget:
        tile_v = max(128, _rup(tile_v // 2, 128))

    N_pad = _rup(N, tile_n)
    V_pad = _rup(V, tile_v)
    vmem_limit = int(min(max(int(1.5 * est_bytes(tile_n, tile_v)),
                             32 * 1024 * 1024), budget))

    # TODO(synk): dropout here is identity (eval mode); training-mode RNG and
    #             1/(1-p) scaling are not reproduced.
    x2 = x.reshape(N, E)
    tgt = origin_nodes.reshape(N, 1).astype(jnp.int32)
    if N_pad != N:
        x2 = jnp.pad(x2, ((0, N_pad - N), (0, 0)))
        tgt = jnp.pad(tgt, ((0, N_pad - N), (0, 0)))

    wt = weight_t
    b2 = bias.reshape(1, V).astype(jnp.float32)
    if V_pad != V:
        wt = jnp.pad(wt, ((0, 0), (0, V_pad - V)))
        # Padded vocab columns get a huge negative bias -> exp underflows to 0,
        # so they never affect the logsumexp nor match a valid target.  Safe
        # because V_pad - V < tile_v (every tile contains a real column).
        b2 = jnp.pad(b2, ((0, 0), (0, V_pad - V)), constant_values=-1e30)

    # bf16 operands: half the HBM traffic / VMEM, native MXU rate; f32 accumulate.
    x2 = x2.astype(compute_dtype)
    wt = wt.astype(compute_dtype)

    grid = (N_pad // tile_n, V_pad // tile_v)
    kernel = functools.partial(_mtm_head_kernel, total_n=N,
                               tile_n=tile_n, tile_v=tile_v)

    out = pl.pallas_call(
        kernel,
        out_shape=jax.ShapeDtypeStruct((grid[0] * 8, 128), jnp.float32),
        grid_spec=pltpu.PrefetchScalarGridSpec(
            num_scalar_prefetch=0,
            grid=grid,
            in_specs=[
                pl.BlockSpec((tile_n, E), lambda i, j: (i, 0)),   # x rows (resident over j)
                pl.BlockSpec((E, tile_v), lambda i, j: (0, j)),   # weight^T vocab slice
                pl.BlockSpec((1, V_pad), lambda i, j: (0, 0)),    # resident f32 bias
                pl.BlockSpec((tile_n, 1), lambda i, j: (i, 0)),   # targets
            ],
            out_specs=pl.BlockSpec((8, 128), lambda i, j: (i, 0)),
            scratch_shapes=[pltpu.VMEM((tile_n, 1), jnp.float32)] * 3,
        ),
        compiler_params=pltpu.CompilerParams(
            dimension_semantics=("parallel", "arbitrary"),
            vmem_limit_bytes=vmem_limit,
        ),
    )(x2, wt, b2, tgt)

    # Per-row-tile partial sums -> mean (padded rows were zeroed in-kernel).
    partials = out.reshape(grid[0], 8, 128)[:, 0, 0]
    return jnp.sum(partials) / jnp.float32(N)


def _reference_loss(x, origin_nodes, weight_t, bias):
    """Pure-JAX f32 reference (torch CrossEntropyLoss with mean reduction)."""
    B, S, E = x.shape
    logits = x.reshape(-1, E) @ weight_t + bias[None, :]
    t = origin_nodes.reshape(-1)
    logp = jax.nn.log_softmax(logits, axis=-1)
    return -jnp.mean(logp[jnp.arange(t.shape[0]), t])


def _make_inputs(key, batch, seq, embed_dim, num_nodes):
    kx, kt, kw, kb = jax.random.split(key, 4)
    x = jax.random.normal(kx, (batch, seq, embed_dim), dtype=jnp.float32)
    origin_nodes = jax.random.randint(kt, (batch, seq), 0, num_nodes, dtype=jnp.int32)
    # Deterministic nn.Linear-style init: U(-1/sqrt(fan_in), 1/sqrt(fan_in)).
    bound = 1.0 / np.sqrt(embed_dim)
    weight = jax.random.uniform(kw, (num_nodes, embed_dim), jnp.float32, -bound, bound)
    bias = jax.random.uniform(kb, (num_nodes,), jnp.float32, -bound, bound)
    return x, origin_nodes, weight.T, bias


if __name__ == "__main__":
    key = jax.random.PRNGKey(0)
    k1, k2, k3 = jax.random.split(key, 3)

    # 1) Small shapes consistent with the module (embed_dim=32, num_nodes=128),
    #    f32 compute path -> tight tolerance against the f32 reference.
    x, nodes, wt, b = _make_inputs(k1, batch=2, seq=8, embed_dim=32, num_nodes=128)
    loss = jax.block_until_ready(
        mtm_head_loss(x, nodes, wt, b, compute_dtype=jnp.float32))
    ref = jax.block_until_ready(_reference_loss(x, nodes, wt, b))
    np.testing.assert_allclose(np.asarray(loss), np.asarray(ref),
                               rtol=5e-5, atol=5e-5)

    # 2) Default bf16 compute path, single row/vocab tile, vocab padding.
    x, nodes, wt, b = _make_inputs(k2, batch=4, seq=96, embed_dim=32, num_nodes=1000)
    loss = jax.block_until_ready(mtm_head_loss(x, nodes, wt, b))
    ref = jax.block_until_ready(_reference_loss(x, nodes, wt, b))
    np.testing.assert_allclose(np.asarray(loss), np.asarray(ref),
                               rtol=2e-2, atol=2e-2)

    # 3) Default bf16, explicit small tiles -> multi-tile grid in both axes,
    #    row padding + vocab padding + the online-logsumexp path.
    x, nodes, wt, b = _make_inputs(k3, batch=3, seq=100, embed_dim=32, num_nodes=1000)
    loss = jax.block_until_ready(mtm_head_loss(x, nodes, wt, b, tile_n=64, tile_v=256))
    ref = jax.block_until_ready(_reference_loss(x, nodes, wt, b))
    np.testing.assert_allclose(np.asarray(loss), np.asarray(ref),
                               rtol=2e-2, atol=2e-2)

    print("KERNEL_OK")
</pallas_src>

<mosaic_0001>
module attributes {stable_mosaic.version = 11 : i64} {
  func.func @_mtm_head_kernel(%arg0: i32, %arg1: i32, %arg2: memref<16x32xf32, #tpu.memory_space<vmem>>, %arg3: memref<32x128xf32, #tpu.memory_space<vmem>>, %arg4: memref<1x128xf32, #tpu.memory_space<vmem>>, %arg5: memref<16x1xi32, #tpu.memory_space<vmem>>, %arg6: memref<8x128xf32, #tpu.memory_space<vmem>>, %arg7: memref<16x1xf32, #tpu.memory_space<vmem>>, %arg8: memref<16x1xf32, #tpu.memory_space<vmem>>, %arg9: memref<16x1xf32, #tpu.memory_space<vmem>>) attributes {dimension_semantics = [#tpu.dimension_semantics<parallel>, #tpu.dimension_semantics<arbitrary>], iteration_bounds = array<i64: 1, 1>, scalar_prefetch = 0 : i64, scratch_operands = 3 : i64, tpu.core_type = #tpu.core_type<tc>, window_params = [{transform_indices = @transform_0, window_bounds = array<i64: 16, 32>}, {transform_indices = @transform_1, window_bounds = array<i64: 32, 128>}, {pipeline_mode = #tpu.pipeline_mode<synchronous>, transform_indices = @transform_2, window_bounds = array<i64: 1, 128>}, {transform_indices = @transform_3, window_bounds = array<i64: 16, 1>}, {transform_indices = @transform_4, window_bounds = array<i64: 8, 128>}]} {
    %c0_i32 = arith.constant 0 : i32
    %0 = arith.cmpi eq, %arg1, %c0_i32 : i32
    %1 = arith.extui %0 : i1 to i32
    %c0_i32_0 = arith.constant 0 : i32
    %2 = arith.cmpi ne, %1, %c0_i32_0 : i32
    scf.if %2 {
      %cst_26 = arith.constant 0xFF800000 : f32
      %45 = vector.broadcast %cst_26 : f32 to vector<16x1xf32>
      %c0_27 = arith.constant 0 : index
      %c0_28 = arith.constant 0 : index
      %46 = vector.load %arg7[%c0_27, %c0_28] : memref<16x1xf32, #tpu.memory_space<vmem>>, vector<16x1xf32>
      tpu.vector_store %arg7[%c0_27, %c0_28], %45 {strides = array<i32>} : memref<16x1xf32, #tpu.memory_space<vmem>>, vector<16x1xf32>,
      %cst_29 = arith.constant 0.000000e+00 : f32
      %47 = vector.broadcast %cst_29 : f32 to vector<16x1xf32>
      %c0_30 = arith.constant 0 : index
      %c0_31 = arith.constant 0 : index
      %48 = vector.load %arg8[%c0_30, %c0_31] : memref<16x1xf32, #tpu.memory_space<vmem>>, vector<16x1xf32>
      tpu.vector_store %arg8[%c0_30, %c0_31], %47 {strides = array<i32>} : memref<16x1xf32, #tpu.memory_space<vmem>>, vector<16x1xf32>,
      %cst_32 = arith.constant 0.000000e+00 : f32
      %49 = vector.broadcast %cst_32 : f32 to vector<16x1xf32>
      %c0_33 = arith.constant 0 : index
      %c0_34 = arith.constant 0 : index
      %50 = vector.load %arg9[%c0_33, %c0_34] : memref<16x1xf32, #tpu.memory_space<vmem>>, vector<16x1xf32>
      tpu.vector_store %arg9[%c0_33, %c0_34], %49 {strides = array<i32>} : memref<16x1xf32, #tpu.memory_space<vmem>>, vector<16x1xf32>,
    } else {
    }
    %c128_i32 = arith.constant 128 : i32
    %3 = arith.muli %arg1, %c128_i32 : i32
    %4 = tpu.assume_multiple %3, 128 : i32
    %c0 = arith.constant 0 : index
    %c0_1 = arith.constant 0 : index
    %5 = vector.load %arg2[%c0, %c0_1] : memref<16x32xf32, #tpu.memory_space<vmem>>, vector<16x32xf32>
    %c0_2 = arith.constant 0 : index
    %c0_3 = arith.constant 0 : index
    %6 = vector.load %arg3[%c0_2, %c0_3] : memref<32x128xf32, #tpu.memory_space<vmem>>, vector<32x128xf32>
    %cst = arith.constant dense<0.000000e+00> : vector<16x128xf32>
    %7 = tpu.matmul %5, %6, %cst {dimension_numbers = #tpu.dot_dimension_numbers<[1], [0], [0], [1], [0, 0, 1, 1], [], []>} : vector<16x32xf32>, vector<32x128xf32>, vector<16x128xf32> -> vector<16x128xf32>
    %c0_4 = arith.constant 0 : index
    %8 = arith.index_cast %4 : i32 to index
    %9 = vector.load %arg4[%c0_4, %8] : memref<1x128xf32, #tpu.memory_space<vmem>>, vector<1x128xf32>
    %10 = vector.broadcast %9 : vector<1x128xf32> to vector<16x128xf32>
    %11 = arith.addf %7, %10 : vector<16x128xf32>
    %c0_5 = arith.constant 0 : index
    %c0_6 = arith.constant 0 : index
    %12 = vector.load %arg7[%c0_5, %c0_6] : memref<16x1xf32, #tpu.memory_space<vmem>>, vector<16x1xf32>
    %cst_7 = arith.constant dense<0xFF800000> : vector<16xf32>
    %13 = vector.multi_reduction <maximumf>, %11, %cst_7 [1] : vector<16x128xf32> to vector<16xf32>
    %14 = vector.shape_cast %13 : vector<16xf32> to vector<16x1xf32>
    %15 = arith.maximumf %12, %14 : vector<16x1xf32>
    %c0_8 = arith.constant 0 : index
    %c0_9 = arith.constant 0 : index
    %16 = vector.load %arg8[%c0_8, %c0_9] : memref<16x1xf32, #tpu.memory_space<vmem>>, vector<16x1xf32>
    %17 = arith.subf %12, %15 : vector<16x1xf32>
    %18 = math.exp %17 : vector<16x1xf32>
    %19 = arith.mulf %16, %18 : vector<16x1xf32>
    %20 = vector.broadcast %15 : vector<16x1xf32> to vector<16x128xf32>
    %21 = arith.subf %11, %20 : vector<16x128xf32>
    %22 = math.exp %21 : vector<16x128xf32>
    %cst_10 = arith.constant dense<0.000000e+00> : vector<16xf32>
    %23 = vector.multi_reduction <add>, %22, %cst_10 [1] : vector<16x128xf32> to vector<16xf32>
    %24 = vector.shape_cast %23 : vector<16xf32> to vector<16x1xf32>
    %25 = arith.addf %19, %24 : vector<16x1xf32>
    %c0_11 = arith.constant 0 : index
    %c0_12 = arith.constant 0 : index
    %26 = vector.load %arg8[%c0_11, %c0_12] : memref<16x1xf32, #tpu.memory_space<vmem>>, vector<16x1xf32>
    tpu.vector_store %arg8[%c0_11, %c0_12], %25 {strides = array<i32>} : memref<16x1xf32, #tpu.memory_space<vmem>>, vector<16x1xf32>,
    %c0_13 = arith.constant 0 : index
    %c0_14 = arith.constant 0 : index
    %27 = vector.load %arg7[%c0_13, %c0_14] : memref<16x1xf32, #tpu.memory_space<vmem>>, vector<16x1xf32>
    tpu.vector_store %arg7[%c0_13, %c0_14], %15 {strides = array<i32>} : memref<16x1xf32, #tpu.memory_space<vmem>>, vector<16x1xf32>,
    %28 = tpu.iota {dimensions = array<i32: 1>} : vector<16x128xi32>
    %c0_15 = arith.constant 0 : index
    %c0_16 = arith.constant 0 : index
    %29 = vector.load %arg5[%c0_15, %c0_16] : memref<16x1xi32, #tpu.memory_space<vmem>>, vector<16x1xi32>
    %c128_i32_17 = arith.constant 128 : i32
    %30 = arith.muli %arg1, %c128_i32_17 : i32
    %31 = vector.broadcast %30 : i32 to vector<16x1xi32>
    %32 = arith.subi %29, %31 : vector<16x1xi32>
    %c0_18 = arith.constant 0 : index
    %c0_19 = arith.constant 0 : index
    %33 = vector.load %arg9[%c0_18, %c0_19] : memref<16x1xf32, #tpu.memory_space<vmem>>, vector<16x1xf32>
    %34 = vector.broadcast %32 : vector<16x1xi32> to vector<16x128xi32>
    %35 = arith.cmpi eq, %28, %34 : vector<16x128xi32>
    %cst_20 = arith.constant 0.000000e+00 : f32
    %36 = vector.broadcast %cst_20 : f32 to vector<16x128xf32>
    %37 = arith.select %35, %11, %36 : vector<16x128xi1>, vector<16x128xf32>
    %cst_21 = arith.constant dense<0.000000e+00> : vector<16xf32>
    %38 = vector.multi_reduction <add>, %37, %cst_21 [1] : vector<16x128xf32> to vector<16xf32>
    %39 = vector.shape_cast %38 : vector<16xf32> to vector<16x1xf32>
    %40 = arith.addf %33, %39 : vector<16x1xf32>
    %c0_22 = arith.constant 0 : index
    %c0_23 = arith.constant 0 : index
    %41 = vector.load %arg9[%c0_22, %c0_23] : memref<16x1xf32, #tpu.memory_space<vmem>>, vector<16x1xf32>
    tpu.vector_store %arg9[%c0_22, %c0_23], %40 {strides = array<i32>} : memref<16x1xf32, #tpu.memory_space<vmem>>, vector<16x1xf32>,
    %c0_i32_24 = arith.constant 0 : i32
    %42 = arith.cmpi eq, %arg1, %c0_i32_24 : i32
    %43 = arith.extui %42 : i1 to i32
    %c0_i32_25 = arith.constant 0 : i32
    %44 = arith.cmpi ne, %43, %c0_i32_25 : i32
    scf.if %44 {
      %c0_26 = arith.constant 0 : index
      %c0_27 = arith.constant 0 : index
      %45 = vector.load %arg7[%c0_26, %c0_27] : memref<16x1xf32, #tpu.memory_space<vmem>>, vector<16x1xf32>
      %c0_28 = arith.constant 0 : index
      %c0_29 = arith.constant 0 : index
      %46 = vector.load %arg8[%c0_28, %c0_29] : memref<16x1xf32, #tpu.memory_space<vmem>>, vector<16x1xf32>
      %47 = math.log %46 : vector<16x1xf32>
      %48 = arith.addf %45, %47 : vector<16x1xf32>
      %c16_i32 = arith.constant 16 : i32
      %49 = arith.muli %arg0, %c16_i32 : i32
      %50 = tpu.iota {dimensions = array<i32: 0>} : vector<16x1xi32>
      %51 = vector.broadcast %49 : i32 to vector<16x1xi32>
      %52 = arith.addi %51, %50 : vector<16x1xi32>
      %c16_i32_30 = arith.constant 16 : i32
      %53 = vector.broadcast %c16_i32_30 : i32 to vector<16x1xi32>
      %54 = arith.cmpi slt, %52, %53 : vector<16x1xi32>
      %c0_31 = arith.constant 0 : index
      %c0_32 = arith.constant 0 : index
      %55 = vector.load %arg9[%c0_31, %c0_32] : memref<16x1xf32, #tpu.memory_space<vmem>>, vector<16x1xf32>
      %56 = arith.subf %48, %55 : vector<16x1xf32>
      %cst_33 = arith.constant 0.000000e+00 : f32
      %57 = vector.broadcast %cst_33 : f32 to vector<16x1xf32>
      %58 = arith.select %54, %56, %57 : vector<16x1xi1>, vector<16x1xf32>
      %59 = vector.shape_cast %58 : vector<16x1xf32> to vector<1x16x1xf32>
      %cst_34 = arith.constant dense<0.000000e+00> : vector<1xf32>
      %60 = vector.multi_reduction <add>, %59, %cst_34 [1, 2] : vector<1x16x1xf32> to vector<1xf32>
      %61 = vector.shape_cast %60 : vector<1xf32> to vector<1x1x1xf32>
      %62 = vector.extract %61[0, 0, 0] : f32 from vector<1x1x1xf32>
      %63 = vector.broadcast %62 : f32 to vector<1x1xf32>
      %64 = vector.shape_cast %63 : vector<1x1xf32> to vector<1x1xf32>
      %65 = vector.broadcast %64 : vector<1x1xf32> to vector<8x128xf32>
      %c0_35 = arith.constant 0 : index
      %c0_36 = arith.constant 0 : index
      %66 = vector.load %arg6[%c0_35, %c0_36] : memref<8x128xf32, #tpu.memory_space<vmem>>, vector<8x128xf32>
      tpu.vector_store %arg6[%c0_35, %c0_36], %65 {strides = array<i32>} : memref<8x128xf32, #tpu.memory_space<vmem>>, vector<8x128xf32>,
    } else {
    }
    return
  }
  func.func @transform_0(%arg0: i32, %arg1: i32) -> (i32, i32) {
    %c0_i32 = arith.constant 0 : i32
    %c0_i32_0 = arith.constant 0 : i32
    return %arg0, %c0_i32 : i32, i32
  }
  func.func @transform_1(%arg0: i32, %arg1: i32) -> (i32, i32) {
    %c0_i32 = arith.constant 0 : i32
    %c0_i32_0 = arith.constant 0 : i32
    return %c0_i32, %arg1 : i32, i32
  }
  func.func @transform_2(%arg0: i32, %arg1: i32) -> (i32, i32) {
    %c0_i32 = arith.constant 0 : i32
    %c0_i32_0 = arith.constant 0 : i32
    %c0_i32_1 = arith.constant 0 : i32
    return %c0_i32, %c0_i32_0 : i32, i32
  }
  func.func @transform_3(%arg0: i32, %arg1: i32) -> (i32, i32) {
    %c0_i32 = arith.constant 0 : i32
    %c0_i32_0 = arith.constant 0 : i32
    return %arg0, %c0_i32 : i32, i32
  }
  func.func @transform_4(%arg0: i32, %arg1: i32) -> (i32, i32) {
    %c0_i32 = arith.constant 0 : i32
    %c0_i32_0 = arith.constant 0 : i32
    return %arg0, %c0_i32 : i32, i32
  }
}

</mosaic_0001>

<bundles_post_ra>
// kernel: tpu_custom_call.1
= control target key start
LH: loop header
LB: loop body
LE: loop exit
PB: predicated region body
PF: predicated region fallthrough
CT: control target
= control target key end

     0   :  { %9 = vsyncpa [#allocation6], 0  ;;  %s371_s0 = inlined_call_operand.vmem [shape: f32[16,32], index: 0, kind: input, shape index: {}]   ;;  %s372_s1 = inlined_call_operand.hbm [shape: f32[32,128], index: 1, kind: input, shape index: {}]   ;;  %s373_s2 = inlined_call_operand.vmem [shape: f32[1,128], index: 2, kind: input, shape index: {}]   ;;  %s374_s3 = inlined_call_operand.vmem [shape: s32[16,1], index: 3, kind: input, shape index: {}]   ;;  %s375_s4 = inlined_call_operand.hbm [shape: f32[8,128], index: 4, kind: output, shape index: {}]  }
   0x1   :  { %10 = vsyncpa [#allocation7], 0  ;;  %s17_s17 = sshll.u32 %s372_s1, 4  ;;  %s304_s18 = smov [#allocation5]   ;;  %s18_s17 = int_to_ptr.hbm [resolvable:$true] %s17_s17 }
   0x2   :  { %s19_s19 = sshll.u32 %s304_s18, 4  ;;  %s305_s20 = smov 128   ;;  %s20_s19 = int_to_ptr.vmem [resolvable:$true] %s19_s19 }
   0x3   :  { %s306_s21 = smov 8  }
   0x4   :  { %25 = dma.hbm_to_vmem [thread:$0]  %s18_s17, 512, %s20_s19, [#allocation6], %s305_s20, %s305_s20, %s306_s21  }
   0x5   :  { %300 = dma.done.wait [#allocation6], 512  }
   0x6   :  { %301 = vsyncadd [#allocation6], 4294966784  ;;  %v307_v0 = vmov 0   ;;  %v51_v1 = vld [vmem:[#allocation5 + $0x18] sm:$0xff]  ;;  %v50_v2 = vld [vmem:[#allocation5 + $0x10] sm:$0xff]  ;;  %vm59_vm0 = vcmask 261120   ;;  %v134_v10 = vlaneseq }
   0x7   :  { %237 = vset.pattern.permute.xlu2 %v307_v0  ;;  %236 = vset.pattern.permute.xlu1 %v307_v0  ;;  %v49_v3 = vld [vmem:[#allocation5 + $0x8] sm:$0xff]  ;;  %v136_v4 = vld [vmem:[%s374_s3] sm:$0xff]  ;;  %v48_v5 = vld [vmem:[#allocation5] sm:$0xff]  ;;  %vm38_vm1 = vcmask 7168   ;;  %v308_v9 = vmov -inf   ;;  %v309_v19 = vmov 0.0  }
   0x8   :  { %238 = vset.pattern.permute.xlu0 %v307_v0  ;;  %78 = vmatpush.msra.mxu0 %v51_v1  ;;  %v46_v6 = vld [vmem:[%s371_s0] sm:$0xff]  ;;  %v47_v7 = vld [vmem:[%s371_s0 + $0x8] sm:$0xff]  ;;  %39 = vst.msk [vmem:[#allocation2] sm:$0xff] %vm38_vm1, %v308_v9  ;;  %v135_v11 = vand.u32 127, %v134_v10  ;;  %s310_s0 = smov [#allocation8]   ;;  %s210_s6 = sshll.u32 %s375_s4, 4  ;;  %s211_s6 = int_to_ptr.hbm [resolvable:$true] %s210_s6 }
   0x9   :  { %223 = vmatpush.msra.mxu1 %v51_v1  ;;  %144 = vperm.xlu2 %237, %v136_v4   ;;  %v137_v8 = vld [vmem:[%s374_s3 + $0x8] sm:$0xff]  ;;  %40 = vst.msk [vmem:[#allocation2 + $0x8] sm:$0xff] %vm38_vm1, %v308_v9  ;;  %v239_v12 = vld [vmem:[%s373_s2] ss:$0 sm:$0xff]  ;;  %s208_s2 = sshll.u32 %s310_s0, 4  ;;  %s209_s2 = int_to_ptr.vmem [resolvable:$true] %s208_s2 }
   0xa   :  { %79 = vmatpush.msra.mxu0 %v50_v2  ;;  %43 = vst.msk [vmem:[#allocation4] sm:$0xff] %vm38_vm1, %v309_v19 }
   0xb   :  { %224 = vmatpush.msra.mxu1 %v50_v2  ;;  %41 = vst.msk [vmem:[#allocation3] sm:$0xff] %vm38_vm1, %v309_v19 }
   0xc   :  { %80 = vmatpush.msra.mxu0 %v49_v3  ;;  %42 = vst.msk [vmem:[#allocation3 + $0x8] sm:$0xff] %vm38_vm1, %v309_v19 }
   0xd   :  { %225 = vmatpush.msra.mxu1 %v49_v3  ;;  %44 = vst.msk [vmem:[#allocation4 + $0x8] sm:$0xff] %vm38_vm1, %v309_v19 }
   0xe   :  { %81 = vmatpush.msra.mxu0 %v48_v5 }
   0xf   :  { %226 = vmatpush.msra.mxu1 %v48_v5  ;;  %221 = vmatmul.msk.f32.vlgmr.msra.gmra.mxu0 %vm59_vm0, %v46_v6  ;;  %v89_v21 = vld [vmem:[#allocation2] sm:$0xff] }
  0x10   :  { %222 = vmatmul.msk.f32.vlgmr.msra.gmra.mxu1 %vm59_vm0, %v47_v7  ;;  %v90_v28 = vld [vmem:[#allocation2 + $0x8] sm:$0xff] }
  0x11   :  { %147 = vperm.xlu2 %237, %v137_v8   ;;  %v141_v22 = vld [vmem:[#allocation4] sm:$0xff] }
  0x12   :  { %v97_v44 = vld [vmem:[#allocation3] sm:$0xff] }
  0x13   :  { %v98_v49 = vld [vmem:[#allocation3 + $0x8] sm:$0xff] }
  0x14   :  { %v142_v50 = vld [vmem:[#allocation4 + $0x8] sm:$0xff] }
  0x63   :  { %v145_v13 = vpop.permute.xlu2 %144 }
  0x64   :  { %vm149_vm2 = vcmp.eq.s32.totalorder %v135_v11, %v145_v13 }
  0x6b   :  { %v148_v20 = vpop.permute.xlu2 %147 }
  0x6c   :  { %vm150_vm3 = vcmp.eq.s32.totalorder %v135_v11, %v148_v20 }
  0x8c   :  { %v83_v14 = vpop.f32.mrf.mxu0 }
  0x8d   :  { %v84_v15 = vadd.f32 %v239_v12, %v83_v14  ;;  %v86_v17 = vpop.f32.mrf.mxu1 }
  0x8e   :  { %v87_v18 = vadd.f32 %v239_v12, %v86_v17 }
  0x8f   :  { %91 = vmax.xlane.f32.xlu0 %v84_v15  ;;  %v151_v16 = vsel %vm149_vm2, %v84_v15, 0.0 }
  0x90   :  { %153 = vadd.xlane.f32.xlu2 %v151_v16  ;;  %v152_v40 = vsel %vm150_vm3, %v87_v18, 0.0 }
  0x97   :  { %93 = vmax.xlane.f32.xlu0 %v87_v18 }
 0x102   :  { %v92_v23 = vpop.xlane.xlu0 %91 }
 0x103   :  { %v95_v24 = vmax.f32 %v89_v21, %v92_v23  ;;  %v154_v25 = vpop.xlane.xlu2 %153 }
 0x104   :  { %v157_v26 = vadd.f32 %v154_v25, %v141_v22 }
 0x105   :  { %v99_v27 = vsub.f32 %v89_v21, %v95_v24  ;;  %132 = vst.msk [vmem:[#allocation2] sm:$0xff] %vm38_vm1, %v95_v24  ;;  %109 = vperm.xlu1 %236, %v95_v24  }
 0x106   :  { %159 = vst.msk [vmem:[#allocation4] sm:$0xff] %vm38_vm1, %v157_v26 }
 0x107   :  { %v101_v41 = vmul.f32 1.442695, %v99_v27 }
 0x10a   :  { %v94_v29 = vpop.xlane.xlu0 %93 }
 0x10b   :  { %v96_v30 = vmax.f32 %v90_v28, %v94_v29 }
 0x10c   :  { %v164_v60 = vld [vmem:[#allocation2] sm:$0xff] }
 0x10d   :  { %v100_v31 = vsub.f32 %v90_v28, %v96_v30  ;;  %133 = vst.msk [vmem:[#allocation2 + $0x8] sm:$0xff] %vm38_vm1, %v96_v30  ;;  %114 = vperm.xlu1 %236, %v96_v30   ;;  %v183_v1 = vld [vmem:[#allocation4] sm:$0xff] }
 0x10f   :  { %v103_v42 = vmul.f32 1.442695, %v100_v31 }
 0x114   :  { %v165_v0 = vld [vmem:[#allocation2 + $0x8] sm:$0xff] }
 0x177   :  { %v110_v32 = vpop.permute.xlu1 %109 }
 0x178   :  { %v117_v33 = vsub.f32 %v84_v15, %v110_v32 }
 0x17a   :  { %v119_v34 = vmul.f32 1.442695, %v117_v33 }
 0x17c   :  { %240 = vpow2.f32 %v119_v34 }
 0x17f   :  { %v115_v35 = vpop.permute.xlu1 %114 }
 0x180   :  { %v118_v36 = vsub.f32 %v87_v18, %v115_v35 }
 0x182   :  { %v241_v37 = vpop.eup %240  ;;  %v121_v38 = vmul.f32 1.442695, %v118_v36 }
 0x183   :  { %123 = vadd.xlane.f32.xlu0 %v241_v37 }
 0x184   :  { %242 = vpow2.f32 %v121_v38 }
 0x185   :  { %244 = vpow2.f32 %v101_v41 }
 0x186   :  { %246 = vpow2.f32 %v103_v42 }
 0x18a   :  { %v243_v39 = vpop.eup %242 }
 0x18b   :  { %155 = vadd.xlane.f32.xlu0 %v152_v40  ;;  %125 = vadd.xlane.f32.xlu1 %v243_v39  ;;  %v245_v43 = vpop.eup %244 }
 0x18c   :  { %v105_v45 = vmul.f32 %v245_v43, %v97_v44  ;;  %v247_v48 = vpop.eup %246 }
 0x18d   :  { %v106_v51 = vmul.f32 %v247_v48, %v98_v49 }
 0x1f6   :  { %v124_v46 = vpop.xlane.xlu0 %123 }
 0x1f7   :  { %v127_v47 = vadd.f32 %v124_v46, %v105_v45 }
 0x1f9   :  { %130 = vst.msk [vmem:[#allocation3] sm:$0xff] %vm38_vm1, %v127_v47 }
 0x1fe   :  { %v156_v52 = vpop.xlane.xlu0 %155  ;;  %v126_v53 = vpop.xlane.xlu1 %125 }
 0x1ff   :  { %v158_v54 = vadd.f32 %v156_v52, %v142_v50  ;;  %v128_v55 = vadd.f32 %v126_v53, %v106_v51 }
 0x200   :  { %v166_v56 = vld [vmem:[#allocation3] sm:$0xff] }
 0x201   :  { %160 = vst.msk [vmem:[#allocation4 + $0x8] sm:$0xff] %vm38_vm1, %v158_v54  ;;  %248 = vlog2.f32 %v166_v56 }
 0x202   :  { %131 = vst.msk [vmem:[#allocation3 + $0x8] sm:$0xff] %vm38_vm1, %v128_v55 }
 0x207   :  { %v249_v57 = vpop.eup %248 }
 0x208   :  { %v169_v59 = vmul.f32 0.6931472, %v249_v57  ;;  %v184_v4 = vld [vmem:[#allocation4 + $0x8] sm:$0xff] }
 0x209   :  { %v167_v58 = vld [vmem:[#allocation3 + $0x8] sm:$0xff] }
 0x20a   :  { %250 = vlog2.f32 %v167_v58  ;;  %v172_v61 = vadd.f32 %v169_v59, %v164_v60 }
 0x20c   :  { %v185_v3 = vsub.f32 %v172_v61, %v183_v1 }
 0x20e   :  { %v189_v6 = vsel %vm38_vm1, %v185_v3, 0.0 }
 0x210   :  { %v251_v62 = vpop.eup %250 }
 0x211   :  { %v171_v63 = vmul.f32 0.6931472, %v251_v62 }
 0x213   :  { %v173_v2 = vadd.f32 %v171_v63, %v165_v0 }
 0x215   :  { %v186_v5 = vsub.f32 %v173_v2, %v184_v4 }
 0x217   :  { %v190_v7 = vsel %vm38_vm1, %v186_v5, 0.0 }
 0x218   :  { %v191_v8 = vadd.f32 %v190_v7, %v189_v6 }
 0x21a   :  { %192 = vadd.xlane.f32.xlu0 %v191_v8 }
 0x28d   :  { %v193_v9 = vpop.xlane.xlu0 %192 }
 0x28e   :  { %v194_v10 = vrot.slane %v193_v9, 4 }
 0x290   :  { %v195_v11 = vadd.f32 %v194_v10, %v193_v9 }
 0x292   :  { %v196_v12 = vrot.slane %v195_v11, 2 }
 0x294   :  { %v197_v13 = vadd.f32 %v196_v12, %v195_v11 }
 0x296   :  { %v198_v14 = vrot.slane %v197_v13, 1 }
 0x298   :  { %v199_v15 = vadd.f32 %v198_v14, %v197_v13 }
 0x29a   :  { %227 = vpush %v199_v15 }
 0x2cb   :  { %s228_s7 = spop %227 }
 0x2cc   :  { %v201_v16 = vstv %s228_s7 }
 0x2cd   :  { %202 = vst [vmem:[#allocation8] sm:$0xff] %v201_v16 }
 0x2ce   :  { %213 = dma.vmem_to_hbm [thread:$0]  %s209_s2, 128, %s211_s6, [#allocation7]  }
 0x2cf   :  { %302 = dma.done.wait [#allocation7], 128  }
 0x2d0   :  { %303 = vsyncadd [#allocation7], 4294967168 }
 0x2d1   :  { %218 = vsyncpa [#allocation6], 1 }
 0x2d2   :  { %219 = vsyncpa [#allocation7], 1 }

</bundles_post_ra>
